<compile_context>
chip_gen: v6e
topology: v6e:2x2x1
jax: 0.10.0
libtpu: 0.0.40
codegen_flags: <defaults>
</compile_context>

<pallas_src>
import jax
import jax.numpy as jnp
from jax import lax
from jax.experimental import pallas as pl
from jax.experimental.pallas import tpu as pltpu

_LANE = 128


# ============================ AvgReadout kernel ================================

def _weighted_sum_kernel(msk_ref, seq_ref, out_ref, acc_ref):
    """Grid = (F tiles [parallel], N tiles [arbitrary/reduction]).

    acc[b, 0, f] += sum_n msk[b, 0, n] * seq[b, n, f]  (MXU, f32 accumulation).
    The divisor (total mask sum or N) is applied in the wrapper.
    """
    k = pl.program_id(1)

    @pl.when(k == 0)
    def _():
        acc_ref[...] = jnp.zeros_like(acc_ref)

    acc_ref[...] += jnp.einsum(
        "bqn,bnf->bqf", msk_ref[...], seq_ref[...],
        preferred_element_type=jnp.float32,
        precision=lax.Precision.HIGHEST)

    @pl.when(k == pl.num_programs(1) - 1)
    def _():
        out_ref[...] = acc_ref[...]


def _choose_readout_tiles(B, N, F, itemsize, seq_buf_budget_bytes):
    # Feature (lane) axis: split into two lane-aligned slices when possible so
    # the parallel grid axis can be sharded across both TensorCores on v7x.
    tile_f = F // 2 if (F % (2 * _LANE) == 0) else F
    # Node axis: largest 128-aligned tile whose seq block fits the per-buffer
    # budget (pipeline double-buffers it); small N is taken whole.
    per_row = max(1, B * tile_f * itemsize)
    tile_n = max(_LANE, (seq_buf_budget_bytes // per_row) // _LANE * _LANE)
    if tile_n >= N:
        tile_n = N
    return tile_n, tile_f


def avg_readout(seq, msk=None, *, seq_buf_budget_bytes=8 * 1024 * 1024):
    """Pallas AvgReadout.forward(seq, msk).  seq: (B,N,F); msk: (B,N) or None."""
    B, N, F = seq.shape
    itemsize = jnp.dtype(seq.dtype).itemsize
    tile_n, tile_f = _choose_readout_tiles(B, N, F, itemsize, seq_buf_budget_bytes)

    # Divisor hoisted out of the kernel (one trivial scalar XLA reduce).
    if msk is None:
        denom = jnp.float32(N)                               # per-row mean
        msk3 = jnp.ones((B, 1, N), dtype=seq.dtype)
    else:
        denom = jnp.sum(msk).astype(jnp.float32)             # scalar total (DGI)
        msk3 = msk.reshape(B, 1, N).astype(seq.dtype)

    # Zero-pad node axis (padded rows / mask entries contribute nothing).
    n_pad = (-N) % tile_n
    if n_pad:
        seq = jnp.pad(seq, ((0, 0), (0, n_pad), (0, 0)))
        msk3 = jnp.pad(msk3, ((0, 0), (0, 0), (0, n_pad)))
    n_total = N + n_pad

    grid = (F // tile_f, n_total // tile_n)

    seq_blk = B * tile_n * tile_f * itemsize
    msk_blk = B * tile_n * itemsize
    out_blk = B * tile_f * 4
    needed = 2 * seq_blk + 2 * msk_blk + 2 * out_blk + out_blk
    vmem_limit = int(min(max(needed + (4 << 20), 32 << 20), 64 << 20))

    raw = pl.pallas_call(
        _weighted_sum_kernel,
        out_shape=jax.ShapeDtypeStruct((B, 1, F), jnp.float32),
        grid_spec=pltpu.PrefetchScalarGridSpec(
            num_scalar_prefetch=0,
            grid=grid,
            in_specs=[
                pl.BlockSpec((B, 1, tile_n), lambda f, k: (0, 0, k)),       # mask
                pl.BlockSpec((B, tile_n, tile_f), lambda f, k: (0, k, f)),  # seq
            ],
            out_specs=pl.BlockSpec((B, 1, tile_f), lambda f, k: (0, 0, f)),
            scratch_shapes=[pltpu.VMEM((B, 1, tile_f), jnp.float32)],
        ),
        compiler_params=pltpu.CompilerParams(
            dimension_semantics=("parallel", "arbitrary"),
            vmem_limit_bytes=vmem_limit,
        ),
    )(msk3, seq)

    return (raw[:, 0, :] / denom).astype(seq.dtype)


# ============================== Fused GCN kernel ===============================

def _gcn_kernel(seq_ref, w_ref, adj_ref, bias_ref, alpha_ref, out_ref, acc_ref):
    """Grid = (batch [parallel], out-node tiles [parallel], contraction tiles
    [arbitrary]).  Computes PReLU( sum_m adj[i,m] @ (seq[m] @ W) + bias )."""
    m = pl.program_id(2)

    @pl.when(m == 0)
    def _():
        acc_ref[...] = jnp.zeros_like(acc_ref)

    # (tile, C) @ (C, H) -> (tile, H) : feature transform, recomputed per i-tile
    # (cheap: C <= tile), keeps seq_fts out of HBM entirely.
    seq_fts = jnp.dot(seq_ref[...], w_ref[...],
                      preferred_element_type=jnp.float32,
                      precision=lax.Precision.HIGHEST)
    # (tile_i, tile_m) @ (tile_m, H) -> (tile_i, H) : adjacency aggregation.
    acc_ref[...] += jnp.dot(adj_ref[...], seq_fts,
                            preferred_element_type=jnp.float32,
                            precision=lax.Precision.HIGHEST)

    @pl.when(m == pl.num_programs(2) - 1)
    def _():
        out = acc_ref[...] + bias_ref[...]                       # (tile,H)+(1,H)
        out = jnp.maximum(out, 0.0) + alpha_ref[...] * jnp.minimum(out, 0.0)
        out_ref[...] = out.astype(out_ref.dtype)


def gcn_forward(seq, w, bias, prelu_a, adj, *, node_tile=256):
    """Pallas GCN.forward (dense adjacency): PReLU(bmm(adj, seq @ W) + bias).

    seq: (B,N,C), w: (C,H), bias: (H,), prelu_a: scalar, adj: (B,N,N).
    """
    B, N, C = seq.shape
    Cw, H = w.shape
    assert Cw == C and adj.shape == (B, N, N)
    dtype = seq.dtype
    itemsize = jnp.dtype(dtype).itemsize

    if N <= node_tile:
        tile, n_pad = N, 0                      # full-N blocks (exempt from 8/128)
    else:
        tile, n_pad = node_tile, (-N) % node_tile

    if n_pad:
        seq = jnp.pad(seq, ((0, 0), (0, n_pad), (0, 0)))
        adj = jnp.pad(adj, ((0, 0), (0, n_pad), (0, n_pad)))
    n_total = N + n_pad
    n_tiles = n_total // tile

    bias2 = jnp.asarray(bias, jnp.float32).reshape(1, H)
    alpha2 = jnp.asarray(prelu_a, jnp.float32).reshape(1, 1)

    adj_blk = tile * tile * itemsize
    seq_blk = tile * C * itemsize
    out_blk = tile * H * itemsize
    w_blk = C * H * itemsize
    needed = 2 * (adj_blk + seq_blk + out_blk + w_blk) + tile * H * 4
    vmem_limit = int(min(max(needed + (4 << 20), 32 << 20), 64 << 20))

    out = pl.pallas_call(
        _gcn_kernel,
        out_shape=jax.ShapeDtypeStruct((B, n_total, H), dtype),
        grid_spec=pltpu.PrefetchScalarGridSpec(
            num_scalar_prefetch=0,
            grid=(B, n_tiles, n_tiles),
            in_specs=[
                pl.BlockSpec((None, tile, C), lambda b, i, m: (b, m, 0)),     # seq
                pl.BlockSpec((C, H), lambda b, i, m: (0, 0)),                 # W
                pl.BlockSpec((None, tile, tile), lambda b, i, m: (b, i, m)),  # adj
                pl.BlockSpec((1, H), lambda b, i, m: (0, 0)),                 # bias
                pl.BlockSpec((1, 1), lambda b, i, m: (0, 0)),                 # alpha
            ],
            out_specs=pl.BlockSpec((None, tile, H), lambda b, i, m: (b, i, 0)),
            scratch_shapes=[pltpu.VMEM((tile, H), jnp.float32)],
        ),
        compiler_params=pltpu.CompilerParams(
            dimension_semantics=("parallel", "parallel", "arbitrary"),
            vmem_limit_bytes=vmem_limit,
        ),
    )(seq, w.astype(dtype), adj, bias2, alpha2)

    if n_pad:
        out = out[:, :N, :]
    return out


# ============================ DGI forward (glue) ===============================

def dgi_forward(params, seq1, seq2, adj, msk=None):
    """DGI.forward (dense-adjacency path).  Sigmoid and the tiny Bilinear
    discriminator stay as plain jnp ops (XLA maps them to MXU/VPU directly)."""
    # TODO(synk): sparse spmm branch of GCN not implemented (dense path only).
    h_1 = gcn_forward(seq1, params["w_fc"], params["b_gcn"], params["prelu_a"], adj)
    c = jax.nn.sigmoid(avg_readout(h_1, msk))
    h_2 = gcn_forward(seq2, params["w_fc"], params["b_gcn"], params["prelu_a"], adj)

    # Bilinear discriminator: sc[b, n] = h[b, n, :] @ Wd @ c[b, :] + bias.
    wc = jnp.einsum("hk,bk->bh", params["w_disc"], c)
    sc_1 = jnp.einsum("bnh,bh->bn", h_1, wc) + params["b_disc"]
    sc_2 = jnp.einsum("bnh,bh->bn", h_2, wc) + params["b_disc"]
    logits = jnp.concatenate([sc_1, sc_2], axis=1)
    return logits, h_1, h_2, c


# ============================== demo / checks ==================================

if __name__ == "__main__":
    key = jax.random.PRNGKey(0)
    ks = jax.random.split(key, 12)

    # ---- AvgReadout checks (small shapes, single-block path) -----------------
    B, N, F = 2, 8, 32
    seq = jax.random.normal(ks[0], (B, N, F), dtype=jnp.float32)
    msk = (jax.random.uniform(ks[1], (B, N)) > 0.3).astype(jnp.float32)

    out = jax.block_until_ready(avg_readout(seq, msk))
    ref = jnp.sum(seq * msk[..., None], axis=1) / jnp.sum(msk)
    assert out.shape == (B, F)
    assert jnp.allclose(out, ref, atol=1e-4, rtol=1e-4)

    out_none = jax.block_until_ready(avg_readout(seq, None))
    ref_none = jnp.mean(seq, axis=1)
    assert jnp.allclose(out_none, ref_none, atol=1e-4, rtol=1e-4)

    # ---- Tiled + padded + parallel-F readout path -----------------------------
    B2, N2, F2 = 2, 300, 256
    seq_big = jax.random.normal(ks[2], (B2, N2, F2), dtype=jnp.float32)
    msk_big = (jax.random.uniform(ks[3], (B2, N2)) > 0.5).astype(jnp.float32)
    out_big = jax.block_until_ready(
        avg_readout(seq_big, msk_big, seq_buf_budget_bytes=128 * 1024))
    ref_big = jnp.sum(seq_big * msk_big[..., None], axis=1) / jnp.sum(msk_big)
    assert jnp.allclose(out_big, ref_big, atol=1e-4, rtol=1e-4)

    # ---- Fused GCN kernel checks ----------------------------------------------
    n_in, n_h = 16, 32
    w_fc = 0.1 * jax.random.normal(ks[4], (n_in, n_h), dtype=jnp.float32)
    b_gcn = 0.1 * jax.random.normal(ks[5], (n_h,), dtype=jnp.float32)
    prelu_a = jnp.float32(0.25)

    def gcn_reference(s, a, bias):
        seq_fts = jnp.einsum("bnc,ch->bnh", s, w_fc, precision=lax.Precision.HIGHEST)
        o = jnp.einsum("bnm,bmh->bnh", a, seq_fts,
                       precision=lax.Precision.HIGHEST) + bias
        return jnp.where(o >= 0, o, prelu_a * o)

    adj = jax.random.uniform(ks[6], (B, N, N), dtype=jnp.float32)
    adj = adj / jnp.sum(adj, axis=-1, keepdims=True)
    seq_a = jax.random.normal(ks[7], (B, N, n_in), dtype=jnp.float32)

    h_small = jax.block_until_ready(gcn_forward(seq_a, w_fc, b_gcn, prelu_a, adj))
    assert jnp.allclose(h_small, gcn_reference(seq_a, adj, b_gcn),
                        atol=1e-4, rtol=1e-4)

    # Padded / tiled GCN path: N=300, tile=128 -> padded to 384, 3x3 node tiles.
    adj_big = jax.random.uniform(ks[8], (B2, N2, N2), dtype=jnp.float32)
    adj_big = adj_big / jnp.sum(adj_big, axis=-1, keepdims=True)
    seq_gbig = jax.random.normal(ks[9], (B2, N2, n_in), dtype=jnp.float32)
    h_big = jax.block_until_ready(
        gcn_forward(seq_gbig, w_fc, b_gcn, prelu_a, adj_big, node_tile=128))
    assert jnp.allclose(h_big, gcn_reference(seq_gbig, adj_big, b_gcn),
                        atol=1e-4, rtol=1e-4)

    # ---- DGI forward smoke test ------------------------------------------------
    params = {
        "w_fc": w_fc,
        "b_gcn": jnp.zeros((n_h,), jnp.float32),   # PyTorch init: bias = 0
        "prelu_a": prelu_a,                        # PyTorch PReLU default 0.25
        "w_disc": 0.1 * jax.random.normal(ks[10], (n_h, n_h), dtype=jnp.float32),
        "b_disc": jnp.float32(0.0),
    }
    seq_b = jnp.flip(seq_a, axis=1)                # "corrupted" features

    logits, h_1, h_2, c = dgi_forward(params, seq_a, seq_b, adj, msk)
    logits = jax.block_until_ready(logits)
    assert logits.shape == (B, 2 * N)
    assert h_1.shape == (B, N, n_h) and c.shape == (B, n_h)
    assert bool(jnp.all(jnp.isfinite(logits)))

    print("KERNEL_OK")
</pallas_src>

<mosaic_0001>
module attributes {stable_mosaic.version = 11 : i64} {
  func.func @_weighted_sum_kernel(%arg0: i32, %arg1: i32, %arg2: memref<2x1x8xf32, #tpu.memory_space<vmem>>, %arg3: memref<2x8x32xf32, #tpu.memory_space<vmem>>, %arg4: memref<2x1x32xf32, #tpu.memory_space<vmem>>, %arg5: memref<2x1x32xf32, #tpu.memory_space<vmem>>) attributes {dimension_semantics = [#tpu.dimension_semantics<parallel>, #tpu.dimension_semantics<arbitrary>], iteration_bounds = array<i64: 1, 1>, scalar_prefetch = 0 : i64, scratch_operands = 1 : i64, tpu.core_type = #tpu.core_type<tc>, window_params = [{transform_indices = @transform_0, window_bounds = array<i64: 2, 1, 8>}, {transform_indices = @transform_1, window_bounds = array<i64: 2, 8, 32>}, {transform_indices = @transform_2, window_bounds = array<i64: 2, 1, 32>}]} {
    %c0_i32 = arith.constant 0 : i32
    %0 = arith.cmpi eq, %arg1, %c0_i32 : i32
    %1 = arith.extui %0 : i1 to i32
    %c0_i32_0 = arith.constant 0 : i32
    %2 = arith.cmpi ne, %1, %c0_i32_0 : i32
    scf.if %2 {
      %cst_14 = arith.constant 0.000000e+00 : f32
      %12 = vector.broadcast %cst_14 : f32 to vector<2x1x32xf32>
      %c0_15 = arith.constant 0 : index
      %c0_16 = arith.constant 0 : index
      %c0_17 = arith.constant 0 : index
      %13 = vector.load %arg5[%c0_15, %c0_16, %c0_17] : memref<2x1x32xf32, #tpu.memory_space<vmem>>, vector<2x1x32xf32>
      tpu.vector_store %arg5[%c0_15, %c0_16, %c0_17], %12 {strides = array<i32>} : memref<2x1x32xf32, #tpu.memory_space<vmem>>, vector<2x1x32xf32>,
    } else {
    }
    %c0 = arith.constant 0 : index
    %c0_1 = arith.constant 0 : index
    %c0_2 = arith.constant 0 : index
    %3 = vector.load %arg5[%c0, %c0_1, %c0_2] : memref<2x1x32xf32, #tpu.memory_space<vmem>>, vector<2x1x32xf32>
    %c0_3 = arith.constant 0 : index
    %c0_4 = arith.constant 0 : index
    %c0_5 = arith.constant 0 : index
    %4 = vector.load %arg2[%c0_3, %c0_4, %c0_5] : memref<2x1x8xf32, #tpu.memory_space<vmem>>, vector<2x1x8xf32>
    %c0_6 = arith.constant 0 : index
    %c0_7 = arith.constant 0 : index
    %c0_8 = arith.constant 0 : index
    %5 = vector.load %arg3[%c0_6, %c0_7, %c0_8] : memref<2x8x32xf32, #tpu.memory_space<vmem>>, vector<2x8x32xf32>
    "tpu.trace_start"() <{level = 10 : i32, message = "bqn,bnf->bqf"}> : () -> ()
    %cst = arith.constant dense<0.000000e+00> : vector<2x1x32xf32>
    %6 = tpu.matmul %4, %5, %cst {dimension_numbers = #tpu.dot_dimension_numbers<[2], [1], [1], [2], [0, 0, 0, 1, 1, 2], [0], [0]>, precision = #tpu.contract_precision<fp32>} : vector<2x1x8xf32>, vector<2x8x32xf32>, vector<2x1x32xf32> -> vector<2x1x32xf32>
    "tpu.trace_stop"() : () -> ()
    %7 = arith.addf %3, %6 : vector<2x1x32xf32>
    %c0_9 = arith.constant 0 : index
    %c0_10 = arith.constant 0 : index
    %c0_11 = arith.constant 0 : index
    %8 = vector.load %arg5[%c0_9, %c0_10, %c0_11] : memref<2x1x32xf32, #tpu.memory_space<vmem>>, vector<2x1x32xf32>
    tpu.vector_store %arg5[%c0_9, %c0_10, %c0_11], %7 {strides = array<i32>} : memref<2x1x32xf32, #tpu.memory_space<vmem>>, vector<2x1x32xf32>,
    %c0_i32_12 = arith.constant 0 : i32
    %9 = arith.cmpi eq, %arg1, %c0_i32_12 : i32
    %10 = arith.extui %9 : i1 to i32
    %c0_i32_13 = arith.constant 0 : i32
    %11 = arith.cmpi ne, %10, %c0_i32_13 : i32
    scf.if %11 {
      %c0_14 = arith.constant 0 : index
      %c0_15 = arith.constant 0 : index
      %c0_16 = arith.constant 0 : index
      %12 = vector.load %arg5[%c0_14, %c0_15, %c0_16] : memref<2x1x32xf32, #tpu.memory_space<vmem>>, vector<2x1x32xf32>
      %c0_17 = arith.constant 0 : index
      %c0_18 = arith.constant 0 : index
      %c0_19 = arith.constant 0 : index
      %13 = vector.load %arg4[%c0_17, %c0_18, %c0_19] : memref<2x1x32xf32, #tpu.memory_space<vmem>>, vector<2x1x32xf32>
      tpu.vector_store %arg4[%c0_17, %c0_18, %c0_19], %12 {strides = array<i32>} : memref<2x1x32xf32, #tpu.memory_space<vmem>>, vector<2x1x32xf32>,
    } else {
    }
    return
  }
  func.func @transform_0(%arg0: i32, %arg1: i32) -> (i32, i32, i32) {
    %c0_i32 = arith.constant 0 : i32
    %c0_i32_0 = arith.constant 0 : i32
    %c0_i32_1 = arith.constant 0 : i32
    return %c0_i32, %c0_i32_0, %arg1 : i32, i32, i32
  }
  func.func @transform_1(%arg0: i32, %arg1: i32) -> (i32, i32, i32) {
    %c0_i32 = arith.constant 0 : i32
    %c0_i32_0 = arith.constant 0 : i32
    return %c0_i32, %arg1, %arg0 : i32, i32, i32
  }
  func.func @transform_2(%arg0: i32, %arg1: i32) -> (i32, i32, i32) {
    %c0_i32 = arith.constant 0 : i32
    %c0_i32_0 = arith.constant 0 : i32
    %c0_i32_1 = arith.constant 0 : i32
    return %c0_i32, %c0_i32_0, %arg0 : i32, i32, i32
  }
}

</mosaic_0001>

<bundles_post_ra>
// kernel: tpu_custom_call.1
= control target key start
LH: loop header
LB: loop body
LE: loop exit
PB: predicated region body
PF: predicated region fallthrough
CT: control target
= control target key end

     0   :  { %7 = vsyncpa [#allocation4], 0  ;;  %s1224_s0 = inlined_call_operand.hbm [shape: f32[2,1,8], index: 0, kind: input, shape index: {}]   ;;  %s1225_s1 = inlined_call_operand.hbm [shape: f32[2,8,32], index: 1, kind: input, shape index: {}]   ;;  %s1226_s2 = inlined_call_operand.hbm [shape: f32[2,1,32], index: 2, kind: output, shape index: {}]  }
   0x1   :  { %8 = vsyncpa [#allocation7], 0 }
   0x2   :  { %9 = vsyncpa [#allocation5], 0  ;;  %s1141_s9 = smov [#allocation3]  }
   0x3   :  { %s15_s10 = sshll.u32 %s1141_s9, 4  ;;  %s16_s10 = int_to_ptr.vmem [resolvable:$true] %s15_s10 }
   0x4   :  { %s1083_s11 = scalar_lea.vmem %s16_s10, 32  ;;  %p1088_p1 = scmp.lt.s32.totalorder %s16_s10, %s16_s10 }
   0x5   :  { %p1084_p0 = scmp.ne.s32.totalorder %s16_s10, %s1083_s11  ;;  %p1089_p2 = scmp.lt.s32.totalorder %s1083_s11, %s1083_s11 }
   0x7   :  { %p1090_p3 = por %p1089_p2, %p1088_p1 }
   0x9   :  { %p1091_p4 = pnand %p1090_p3, %p1084_p0 }
   0xb   :  { %1094 = shalt.err (!%p1091_p4)
}
   0xc   :  { %s1142_s12 = smov 16   ;;  %s1143_s13 = smov 1  }
   0xd   :  { %21 = dma.hbm_to_vmem [thread:$0]  %s1224_s0, 32, %s16_s10, [#allocation4], %s1142_s12, %s1142_s12, %s1143_s13  }
   0xe   :  { %s1144_s16 = smov [#allocation6]  }
   0xf   :  { %s27_s17 = sshll.u32 %s1144_s16, 4  ;;  %s28_s17 = int_to_ptr.vmem [resolvable:$true] %s27_s17 }
  0x10   :  { %s1103_s18 = scalar_lea.vmem %s28_s17, 256  ;;  %p1108_p6 = scmp.lt.s32.totalorder %s28_s17, %s28_s17 }
  0x11   :  { %p1104_p5 = scmp.ne.s32.totalorder %s28_s17, %s1103_s18  ;;  %p1109_p7 = scmp.lt.s32.totalorder %s1103_s18, %s1103_s18 }
  0x13   :  { %p1110_p8 = por %p1109_p7, %p1108_p6 }
  0x15   :  { %p1111_p9 = pnand %p1110_p8, %p1104_p5 }
  0x17   :  { %1114 = shalt.err (!%p1111_p9)
}
  0x18   :  { %s1145_s19 = smov 128   ;;  %s1146_s20 = smov 8  }
  0x19   :  { %33 = dma.hbm_to_vmem [thread:$0]  %s1225_s1, 256, %s28_s17, [#allocation7], %s1145_s19, %s1145_s19, %s1146_s20  }
  0x1a   :  { %1135 = dma.done.wait [#allocation4], 32  }
  0x1b   :  { %1136 = vsyncadd [#allocation4], 4294967264 }
  0x1c   :  { %1137 = dma.done.wait [#allocation7], 256  }
  0x1d   :  { %1138 = vsyncadd [#allocation7], 4294967040  ;;  %v1147_v0 = vmov 0.0   ;;  %vm1148_vm0 = vmmov 0   ;;  %vm53_vm1 = vcmask 64512   ;;  %v51_v1 = vld [vmem:[#allocation6] sm:$0xff] }
  0x1e   :  { %1006 = vmatprep.subr.mxu0 %v1147_v0  ;;  %1011 = vmatprep.subr.mxu1 %v1147_v0  ;;  %v49_v2 = vld [vmem:[#allocation3] sm:$0x1]  ;;  %v50_v3 = vld [vmem:[#allocation3 + $0x1] sm:$0x1]  ;;  %v88_v4 = vand.u32 4294901760, %v51_v1  ;;  %v52_v7 = vld [vmem:[#allocation6 + $0x8] sm:$0xff] }
  0x1f   :  { %1008 = vmatprep.mubr.msk.f32.mxu0 %vm1148_vm0, %v1147_v0  ;;  %1013 = vmatprep.mubr.msk.f32.mxu1 %vm1148_vm0, %v1147_v0  ;;  %v55_v5 = vsel %vm53_vm1, %v49_v2, 0  ;;  %v504_v6 = vsel %vm53_vm1, %v50_v3, 0  ;;  %v537_v9 = vand.u32 4294901760, %v52_v7  ;;  %vm44_vm2 = vcmask 253952   ;;  %s1149_s0 = smov [#allocation8]  }
  0x20   :  { %v123_v8 = vand.u32 4294901760, %v55_v5  ;;  %1007 = vmatpush3.msra.mxu0 %v88_v4  ;;  %v165_v10 = vsub.f32 %v51_v1, %v88_v4  ;;  %v572_v12 = vand.u32 4294901760, %v504_v6  ;;  %45 = vst.msk [vmem:[#allocation2] sm:$0x1] %vm44_vm2, %v1147_v0  ;;  %46 = vst.msk [vmem:[#allocation2 + $0x1] sm:$0x1] %vm44_vm2, %v1147_v0 }
  0x21   :  { %1016 = vmatprep.subr.mxu0 %v1147_v0  ;;  %v614_v15 = vsub.f32 %v52_v7, %v537_v9  ;;  %s969_s1 = sshll.u32 %s1149_s0, 4  ;;  %s970_s1 = int_to_ptr.vmem [resolvable:$true] %s969_s1 }
  0x22   :  { %v124_v11 = vsub.f32 %v55_v5, %v123_v8  ;;  %v166_v13 = vand.u32 4294901760, %v165_v10  ;;  %v573_v18 = vsub.f32 %v504_v6, %v572_v12  ;;  %s1115_s23 = scalar_lea.vmem %s970_s1, 32  ;;  %p1120_p11 = scmp.lt.s32.totalorder %s970_s1, %s970_s1 }
  0x23   :  { %v615_v21 = vand.u32 4294901760, %v614_v15  ;;  %p1116_p10 = scmp.ne.s32.totalorder %s970_s1, %s1115_s23  ;;  %p1121_p12 = scmp.lt.s32.totalorder %s1115_s23, %s1115_s23 }
  0x24   :  { %v125_v14 = vand.u32 4294901760, %v124_v11  ;;  %v167_v16 = vsub.f32 %v165_v10, %v166_v13  ;;  %v574_v22 = vand.u32 4294901760, %v573_v18 }
  0x25   :  { %v616_v23 = vsub.f32 %v614_v15, %v615_v21  ;;  %p1122_p13 = por %p1121_p12, %p1120_p11 }
  0x26   :  { %v126_v17 = vsub.f32 %v124_v11, %v125_v14  ;;  %v168_v19 = vand.u32 4294901760, %v167_v16  ;;  %v575_v24 = vsub.f32 %v573_v18, %v574_v22 }
  0x27   :  { %v617_v25 = vand.u32 4294901760, %v616_v23  ;;  %v47_v41 = vld [vmem:[#allocation2] sm:$0x1]  ;;  %v48_v60 = vld [vmem:[#allocation2 + $0x1] sm:$0x1]  ;;  %p1123_p0 = pnand %p1122_p13, %p1116_p10 }
  0x28   :  { %v127_v20 = vand.u32 4294901760, %v126_v17  ;;  %1012 = vmatpush3.msra.mxu1 %v168_v19  ;;  %v576_v26 = vand.u32 4294901760, %v575_v24 }
  0x29   :  { %1014 = vmatmul.mubr.f32.vlgmr.msra.gmra.mxu1 %v123_v8  ;;  %1021 = vmatprep.subr.mxu1 %v1147_v0 }
  0x2a   :  { %1009 = vmatmul.mubr.f32.vlgmr.msra.gmra.mxu0 %v127_v20  ;;  %1022 = vmatpush3.msra.mxu1 %v88_v4 }
  0x2b   :  { %1017 = vmatpush3.msra.mxu0 %v165_v10  ;;  %1018 = vmatprep.mubr.msk.f32.mxu0 %vm1148_vm0, %v1147_v0 }
  0x2c   :  { %1023 = vmatprep.mubr.msk.f32.mxu1 %vm1148_vm0, %v1147_v0  ;;  %1026 = vmatprep.subr.mxu0 %v1147_v0 }
  0x2d   :  { %1024 = vmatmul.mubr.f32.vlgmr.msra.gmra.mxu1 %v125_v14  ;;  %1031 = vmatprep.subr.mxu1 %v1147_v0 }
  0x2e   :  { %1019 = vmatmul.mubr.f32.vlgmr.msra.gmra.mxu0 %v124_v11  ;;  %1032 = vmatpush3.msra.mxu1 %v88_v4 }
  0x2f   :  { %1027 = vmatpush3.msra.mxu0 %v166_v13  ;;  %1028 = vmatprep.mubr.msk.f32.mxu0 %vm1148_vm0, %v1147_v0 }
  0x30   :  { %1033 = vmatprep.mubr.msk.f32.mxu1 %vm1148_vm0, %v1147_v0  ;;  %1036 = vmatprep.subr.mxu0 %v1147_v0 }
  0x31   :  { %1034 = vmatmul.mubr.f32.vlgmr.msra.gmra.mxu1 %v123_v8  ;;  %1041 = vmatprep.subr.mxu1 %v1147_v0 }
  0x32   :  { %1029 = vmatmul.mubr.f32.vlgmr.msra.gmra.mxu0 %v123_v8  ;;  %1042 = vmatpush3.msra.mxu1 %v617_v25 }
  0x33   :  { %1037 = vmatpush3.msra.mxu0 %v537_v9  ;;  %1038 = vmatprep.mubr.msk.f32.mxu0 %vm1148_vm0, %v1147_v0 }
  0x34   :  { %1043 = vmatprep.mubr.msk.f32.mxu1 %vm1148_vm0, %v1147_v0  ;;  %1046 = vmatprep.subr.mxu0 %v1147_v0 }
  0x35   :  { %1044 = vmatmul.mubr.f32.vlgmr.msra.gmra.mxu1 %v572_v12  ;;  %1051 = vmatprep.subr.mxu1 %v1147_v0 }
  0x36   :  { %1039 = vmatmul.mubr.f32.vlgmr.msra.gmra.mxu0 %v576_v26  ;;  %1052 = vmatpush3.msra.mxu1 %v537_v9 }
  0x37   :  { %1047 = vmatpush3.msra.mxu0 %v614_v15  ;;  %1048 = vmatprep.mubr.msk.f32.mxu0 %vm1148_vm0, %v1147_v0 }
  0x38   :  { %1053 = vmatprep.mubr.msk.f32.mxu1 %vm1148_vm0, %v1147_v0  ;;  %1056 = vmatprep.subr.mxu0 %v1147_v0 }
  0x39   :  { %1054 = vmatmul.mubr.f32.vlgmr.msra.gmra.mxu1 %v574_v22  ;;  %1061 = vmatprep.subr.mxu1 %v1147_v0 }
  0x3a   :  { %1049 = vmatmul.mubr.f32.vlgmr.msra.gmra.mxu0 %v573_v18  ;;  %1062 = vmatpush3.msra.mxu1 %v537_v9 }
  0x3b   :  { %1057 = vmatpush3.msra.mxu0 %v615_v21  ;;  %1058 = vmatprep.mubr.msk.f32.mxu0 %vm1148_vm0, %v1147_v0 }
  0x3c   :  { %1063 = vmatprep.mubr.msk.f32.mxu1 %vm1148_vm0, %v1147_v0 }
  0x3d   :  { %1064 = vmatmul.mubr.f32.vlgmr.msra.gmra.mxu1 %v572_v12 }
  0x3e   :  { %1059 = vmatmul.mubr.f32.vlgmr.msra.gmra.mxu0 %v572_v12 }
  0xe9   :  { %v205_v28 = vpop.f32.mrf.mxu1 }
  0xea   :  { %v129_v27 = vpop.f32.mrf.mxu0 }
  0xeb   :  { %v1015_v30 = vpop.f32.mrf.mxu1  ;;  %v206_v31 = vadd.f32 %v205_v28, %v129_v27 }
  0xec   :  { %v1010_v29 = vpop.f32.mrf.mxu0 }
  0xed   :  { %v353_v33 = vpop.f32.mrf.mxu1 }
  0xee   :  { %v279_v32 = vpop.f32.mrf.mxu0 }
  0xef   :  { %v280_v34 = vadd.f32 %v279_v32, %v206_v31  ;;  %v1025_v36 = vpop.f32.mrf.mxu1 }
  0xf0   :  { %v1020_v35 = vpop.f32.mrf.mxu0 }
  0xf1   :  { %v354_v37 = vadd.f32 %v353_v33, %v280_v34  ;;  %v499_v39 = vpop.f32.mrf.mxu1 }
  0xf2   :  { %v427_v38 = vpop.f32.mrf.mxu0 }
  0xf3   :  { %v428_v40 = vadd.f32 %v427_v38, %v354_v37  ;;  %v1035_v43 = vpop.f32.mrf.mxu1 }
  0xf4   :  { %v1030_v42 = vpop.f32.mrf.mxu0 }
  0xf5   :  { %v500_v44 = vadd.f32 %v499_v39, %v428_v40  ;;  %v654_v46 = vpop.f32.mrf.mxu1 }
  0xf6   :  { %v578_v45 = vpop.f32.mrf.mxu0 }
  0xf7   :  { %v952_v47 = vadd.f32 %v500_v44, %v47_v41  ;;  %v1045_v49 = vpop.f32.mrf.mxu1  ;;  %v655_v50 = vadd.f32 %v654_v46, %v578_v45 }
  0xf8   :  { %v1040_v48 = vpop.f32.mrf.mxu0 }
  0xf9   :  { %955 = vst.msk [vmem:[#allocation2] sm:$0x1] %vm44_vm2, %v952_v47  ;;  %v802_v52 = vpop.f32.mrf.mxu1 }
  0xfa   :  { %v728_v51 = vpop.f32.mrf.mxu0 }
  0xfb   :  { %v729_v53 = vadd.f32 %v728_v51, %v655_v50  ;;  %v1055_v55 = vpop.f32.mrf.mxu1 }
  0xfc   :  { %v1050_v54 = vpop.f32.mrf.mxu0 }
  0xfd   :  { %v803_v56 = vadd.f32 %v802_v52, %v729_v53  ;;  %v948_v58 = vpop.f32.mrf.mxu1 }
  0xfe   :  { %v876_v57 = vpop.f32.mrf.mxu0 }
  0xff   :  { %v877_v59 = vadd.f32 %v876_v57, %v803_v56  ;;  %v1065_v62 = vpop.f32.mrf.mxu1 }
 0x100   :  { %v1060_v61 = vpop.f32.mrf.mxu0  ;;  %v960_v63 = vld [vmem:[#allocation2] sm:$0x1] }
 0x101   :  { %v949_v0 = vadd.f32 %v948_v58, %v877_v59  ;;  %962 = vst.msk [vmem:[#allocation8] sm:$0x1] %vm44_vm2, %v960_v63 }
 0x103   :  { %v953_v1 = vadd.f32 %v949_v0, %v48_v60 }
 0x105   :  { %956 = vst.msk [vmem:[#allocation2 + $0x1] sm:$0x1] %vm44_vm2, %v953_v1 }
 0x10c   :  { %v961_v2 = vld [vmem:[#allocation2 + $0x1] sm:$0x1] }
 0x10d   :  { %963 = vst.msk [vmem:[#allocation8 + $0x1] sm:$0x1] %vm44_vm2, %v961_v2 }
 0x10e   :  { %1126 = shalt.err (!%p1123_p0)
}
 0x10f   :  { %975 = dma.vmem_to_hbm [thread:$0]  %s970_s1, 32, %s1226_s2, [#allocation5], %s1142_s12, %s1142_s12, %s1143_s13  }
 0x110   :  { %1139 = dma.done.wait [#allocation5], 32  }
 0x111   :  { %1140 = vsyncadd [#allocation5], 4294967264 }
 0x112   :  { %979 = vsyncpa [#allocation4], 1 }
 0x113   :  { %980 = vsyncpa [#allocation7], 1 }
 0x114   :  { %981 = vsyncpa [#allocation5], 1 }

</bundles_post_ra>
